<compile_context>
chip_gen: v6e
topology: v6e:2x2x1
jax: 0.10.0
libtpu: 0.0.40
codegen_flags: <defaults>
</compile_context>

<pallas_src>
import jax
import jax.numpy as jnp
from jax import lax
from jax.experimental import pallas as pl
from jax.experimental.pallas import tpu as pltpu

_SQRT_HALF = 0.7071067811865476  # 1/sqrt(2) (multiply, not divide)


def _gelu_erf(x):
    # Matches torch: x * 0.5 * (1 + erf(x / sqrt(2)))
    return x * 0.5 * (1.0 + lax.erf(x * _SQRT_HALF))


def _round_up(x, m):
    return (x + m - 1) // m * m


def _pick_tile_min_pad(dim, candidates):
    """Pick the tile from `candidates` (descending) minimizing padding waste;
    larger tile wins ties."""
    best = candidates[0]
    best_pad = _round_up(dim, best) - dim
    for c in candidates[1:]:
        pad = _round_up(dim, c) - dim
        if pad < best_pad:
            best, best_pad = c, pad
    return best


def _pick_divisor_tile(dim, step, max_tile):
    """Largest multiple of `step` that divides `dim` and is <= max_tile."""
    for c in range(max_tile, step - 1, -step):
        if dim % c == 0:
            return c
    return step


def _vmem_limit_bytes():
    # Per-generation scoped-VMEM budget: stay well under physical capacity
    # (64 MiB per TC on v7x, 128 MiB on v5e/v6e).
    try:
        cap = int(pltpu.get_tpu_info().vmem_capacity_bytes)
    except Exception:
        cap = 64 * 1024 * 1024  # assume the smallest (v7x) if query fails
    return max(32 * 1024 * 1024, min(int(cap * 0.6), 100 * 1024 * 1024))


# ----------------------------- kernels ------------------------------------


def _intermediate_kernel_single_k(x_ref, w_ref, b_ref, o_ref):
    # Whole-K in one step: no accumulator, epilogue fused directly.
    y = jnp.dot(x_ref[...], w_ref[...], preferred_element_type=jnp.float32)
    y = y + b_ref[...].astype(jnp.float32)
    o_ref[...] = _gelu_erf(y).astype(o_ref.dtype)


def _intermediate_kernel_k_acc(x_ref, w_ref, b_ref, o_ref, acc_ref):
    # K-tiled reduction (K is the last, "arbitrary" grid axis).
    k = pl.program_id(2)
    prod = jnp.dot(x_ref[...], w_ref[...], preferred_element_type=jnp.float32)

    @pl.when(k == 0)
    def _():
        acc_ref[...] = prod          # first step: direct write (no zero-init+add)

    @pl.when(k > 0)
    def _():
        acc_ref[...] += prod

    @pl.when(k == pl.num_programs(2) - 1)
    def _():
        y = acc_ref[...] + b_ref[...].astype(jnp.float32)
        o_ref[...] = _gelu_erf(y).astype(o_ref.dtype)


# --------------------------- parameter prep --------------------------------


def prepare_intermediate_params(weight, bias, *, compute_dtype=jnp.bfloat16):
    """One-time parameter prep (do NOT run per forward call).

    weight: torch-style (4E, E) nn.Linear weight
    bias:   (4E,)

    Returns (weight_t, bias_2d, out_features):
      weight_t: (E, Np) pre-transposed, lane-padded to Np = round_up(4E, 128),
                already cast to the matmul compute dtype (bf16 by default).
      bias_2d:  (1, Np) float32 (epilogue stays in f32).
      out_features: true 4E (for slicing padded output columns).
    """
    n_out, _e = weight.shape
    np_ = _round_up(n_out, 128)
    w_t = weight.T  # (E, 4E)
    if np_ != n_out:
        w_t = jnp.pad(w_t, ((0, 0), (0, np_ - n_out)))
    w_t = w_t.astype(compute_dtype)
    b = bias.astype(jnp.float32).reshape(1, -1)
    if np_ != n_out:
        b = jnp.pad(b, ((0, 0), (0, np_ - n_out)))
    return w_t, b, n_out


# ------------------------------ forward ------------------------------------


def intermediate_forward(hidden_states, weight_t, bias_2d, out_features=None, *,
                         max_tm=512, max_tn=1024, max_single_tk=2048):
    """hidden_states: (B, S, E); weight_t: (E, Np) prepared; bias_2d: (1, Np) f32."""
    B, S, E = hidden_states.shape
    Kw, Np = weight_t.shape
    assert Kw == E, f"weight K dim {Kw} != embedding size {E}"
    assert bias_2d.shape == (1, Np)
    N = Np if out_features is None else out_features

    M = B * S
    out_dtype = hidden_states.dtype
    op_dtype = weight_t.dtype                 # compute dtype comes from prepared W
    op_bytes = jnp.dtype(op_dtype).itemsize

    x = hidden_states.reshape(M, E).astype(op_dtype)

    # ---- tile selection ----------------------------------------------------
    # Sublane packing: bf16 packs 2 rows/sublane -> tm multiple of 16 (8 for f32).
    sub = max(8, 32 // op_bytes)
    tm_candidates = [c for c in (512, 256, 128, 64, 32, 16, 8)
                     if c <= max_tm and c % sub == 0]
    tm = _pick_tile_min_pad(M, tm_candidates)
    # N was pre-padded to a multiple of 128 at prep time; pick the largest
    # lane-dense tile dividing it (no further W/bias padding in forward).
    tn = _pick_divisor_tile(Np, 128, max_tn)

    # K: whole reduction in one step when it fits; else 128-multiple tile
    # minimizing zero-pad waste.
    if E <= max_single_tk:
        tk, Kp = E, E
    else:
        tk = _pick_tile_min_pad(E, (1024, 512, 256, 128))
        Kp = _round_up(E, tk)

    Mp = _round_up(M, tm)

    # ---- padding (activations only; weights were padded once at prep) ------
    if (Mp, Kp) != (M, E):
        x = jnp.pad(x, ((0, Mp - M), (0, Kp - E)))
    w = weight_t
    if Kp != E:
        # TODO(synk): for E > max_single_tk the weight K-pad happens per call;
        # hoist into prepare_intermediate_params if such sizes are ever used.
        w = jnp.pad(w, ((0, Kp - E), (0, 0)))

    cost = pl.CostEstimate(
        flops=2 * M * N * E,
        transcendentals=M * N,                # erf in the GELU epilogue
        bytes_accessed=(M * E + E * Np) * op_bytes + Np * 4
                       + M * N * jnp.dtype(out_dtype).itemsize,
    )
    vmem_limit = _vmem_limit_bytes()

    if Kp == tk:
        # Single-K path: 2-D grid, no accumulator scratch.
        grid = (Mp // tm, Np // tn)
        out = pl.pallas_call(
            _intermediate_kernel_single_k,
            out_shape=jax.ShapeDtypeStruct((Mp, Np), out_dtype),
            grid_spec=pltpu.PrefetchScalarGridSpec(
                num_scalar_prefetch=0,
                grid=grid,
                in_specs=[
                    pl.BlockSpec((tm, tk), lambda i, j: (i, 0)),   # x tile
                    pl.BlockSpec((tk, tn), lambda i, j: (0, j)),   # W tile
                    pl.BlockSpec((1, tn), lambda i, j: (0, j)),    # bias tile
                ],
                out_specs=pl.BlockSpec((tm, tn), lambda i, j: (i, j)),
            ),
            compiler_params=pltpu.CompilerParams(
                dimension_semantics=("parallel", "parallel"),
                vmem_limit_bytes=vmem_limit),
            cost_estimate=cost,
        )(x, w, bias_2d)
    else:
        # K-tiled path: 3-D grid, K last ("arbitrary") with f32 accumulator.
        grid = (Mp // tm, Np // tn, Kp // tk)
        out = pl.pallas_call(
            _intermediate_kernel_k_acc,
            out_shape=jax.ShapeDtypeStruct((Mp, Np), out_dtype),
            grid_spec=pltpu.PrefetchScalarGridSpec(
                num_scalar_prefetch=0,
                grid=grid,
                in_specs=[
                    pl.BlockSpec((tm, tk), lambda i, j, k: (i, k)),   # x tile
                    pl.BlockSpec((tk, tn), lambda i, j, k: (k, j)),   # W tile
                    pl.BlockSpec((1, tn), lambda i, j, k: (0, j)),    # bias tile
                ],
                out_specs=pl.BlockSpec((tm, tn), lambda i, j, k: (i, j)),
                scratch_shapes=[pltpu.VMEM((tm, tn), jnp.float32)],
            ),
            compiler_params=pltpu.CompilerParams(
                dimension_semantics=("parallel", "parallel", "arbitrary"),
                vmem_limit_bytes=vmem_limit),
            cost_estimate=cost,
        )(x, w, bias_2d)

    if (Mp, Np) != (M, N):
        out = out[:M, :N]
    return out.reshape(B, S, N)


# ------------------------------- demo ---------------------------------------


if __name__ == "__main__":
    # Small shapes consistent with the module: embedding_size = 32
    B, S, E = 2, 8, 32
    N = 4 * E

    key = jax.random.PRNGKey(0)
    kx, kw, kb = jax.random.split(key, 3)

    hidden_states = jax.random.normal(kx, (B, S, E), dtype=jnp.float32)
    # torch-style nn.Linear(E, 4E) parameters
    weight = jax.random.normal(kw, (N, E), dtype=jnp.float32) * 0.02
    bias = jax.random.normal(kb, (N,), dtype=jnp.float32) * 0.02

    # Plain-JAX reference (same erf-based GELU as torch).
    ref = hidden_states @ weight.T + bias
    ref = ref * 0.5 * (1.0 + lax.erf(ref * _SQRT_HALF))

    # Default path: bf16 MXU operands, f32 accumulation + f32 epilogue.
    w_bf16, b2, n_out = prepare_intermediate_params(weight, bias)
    w_bf16, b2 = jax.block_until_ready((w_bf16, b2))
    y_bf16 = intermediate_forward(hidden_states, w_bf16, b2, n_out)
    jax.block_until_ready(y_bf16)
    assert y_bf16.shape == (B, S, N)
    assert jnp.allclose(y_bf16, ref, atol=1e-2, rtol=1e-2)

    # Full-f32 path (exact torch parity at tight tolerance).
    w_f32, b2f, n_out = prepare_intermediate_params(
        weight, bias, compute_dtype=jnp.float32)
    y_f32 = intermediate_forward(hidden_states, w_f32, b2f, n_out)
    jax.block_until_ready(y_f32)
    assert jnp.allclose(y_f32, ref, atol=1e-5, rtol=1e-5)

    print("KERNEL_OK")
</pallas_src>

<mosaic_0001>
module attributes {stable_mosaic.version = 11 : i64} {
  func.func @_intermediate_kernel_single_k(%arg0: i32, %arg1: i32, %arg2: memref<16x32xbf16, #tpu.memory_space<vmem>>, %arg3: memref<32x128xbf16, #tpu.memory_space<vmem>>, %arg4: memref<1x128xf32, #tpu.memory_space<vmem>>, %arg5: memref<16x128xf32, #tpu.memory_space<vmem>>) attributes {dimension_semantics = [#tpu.dimension_semantics<parallel>, #tpu.dimension_semantics<parallel>], iteration_bounds = array<i64: 1, 1>, scalar_prefetch = 0 : i64, scratch_operands = 0 : i64, tpu.core_type = #tpu.core_type<tc>, window_params = [{transform_indices = @transform_0, window_bounds = array<i64: 16, 32>}, {transform_indices = @transform_1, window_bounds = array<i64: 32, 128>}, {transform_indices = @transform_2, window_bounds = array<i64: 1, 128>}, {transform_indices = @transform_3, window_bounds = array<i64: 16, 128>}]} {
    %c0 = arith.constant 0 : index
    %c0_0 = arith.constant 0 : index
    %0 = vector.load %arg2[%c0, %c0_0] : memref<16x32xbf16, #tpu.memory_space<vmem>>, vector<16x32xbf16>
    %c0_1 = arith.constant 0 : index
    %c0_2 = arith.constant 0 : index
    %1 = vector.load %arg3[%c0_1, %c0_2] : memref<32x128xbf16, #tpu.memory_space<vmem>>, vector<32x128xbf16>
    %cst = arith.constant dense<0.000000e+00> : vector<16x128xf32>
    %2 = tpu.matmul %0, %1, %cst {dimension_numbers = #tpu.dot_dimension_numbers<[1], [0], [0], [1], [0, 0, 1, 1], [], []>} : vector<16x32xbf16>, vector<32x128xbf16>, vector<16x128xf32> -> vector<16x128xf32>
    %c0_3 = arith.constant 0 : index
    %c0_4 = arith.constant 0 : index
    %3 = vector.load %arg4[%c0_3, %c0_4] : memref<1x128xf32, #tpu.memory_space<vmem>>, vector<1x128xf32>
    %4 = vector.broadcast %3 : vector<1x128xf32> to vector<16x128xf32>
    %5 = arith.addf %2, %4 : vector<16x128xf32>
    %cst_5 = arith.constant 5.000000e-01 : f32
    %6 = vector.broadcast %cst_5 : f32 to vector<16x128xf32>
    %7 = arith.mulf %5, %6 : vector<16x128xf32>
    %cst_6 = arith.constant 0.707106769 : f32
    %8 = vector.broadcast %cst_6 : f32 to vector<16x128xf32>
    %9 = arith.mulf %5, %8 : vector<16x128xf32>
    %10 = math.erf %9 : vector<16x128xf32>
    %cst_7 = arith.constant 1.000000e+00 : f32
    %11 = vector.broadcast %cst_7 : f32 to vector<16x128xf32>
    %12 = arith.addf %11, %10 : vector<16x128xf32>
    %13 = arith.mulf %7, %12 : vector<16x128xf32>
    %c0_8 = arith.constant 0 : index
    %c0_9 = arith.constant 0 : index
    %14 = vector.load %arg5[%c0_8, %c0_9] : memref<16x128xf32, #tpu.memory_space<vmem>>, vector<16x128xf32>
    tpu.vector_store %arg5[%c0_8, %c0_9], %13 {strides = array<i32>} : memref<16x128xf32, #tpu.memory_space<vmem>>, vector<16x128xf32>,
    return
  }
  func.func @transform_0(%arg0: i32, %arg1: i32) -> (i32, i32) {
    %c0_i32 = arith.constant 0 : i32
    %c0_i32_0 = arith.constant 0 : i32
    return %arg0, %c0_i32 : i32, i32
  }
  func.func @transform_1(%arg0: i32, %arg1: i32) -> (i32, i32) {
    %c0_i32 = arith.constant 0 : i32
    %c0_i32_0 = arith.constant 0 : i32
    return %c0_i32, %arg1 : i32, i32
  }
  func.func @transform_2(%arg0: i32, %arg1: i32) -> (i32, i32) {
    %c0_i32 = arith.constant 0 : i32
    %c0_i32_0 = arith.constant 0 : i32
    return %c0_i32, %arg1 : i32, i32
  }
  func.func @transform_3(%arg0: i32, %arg1: i32) -> (i32, i32) {
    %c0_i32 = arith.constant 0 : i32
    return %arg0, %arg1 : i32, i32
  }
}

</mosaic_0001>

<bundles_post_ra>
// kernel: tpu_custom_call.1
= control target key start
LH: loop header
LB: loop body
LE: loop exit
PB: predicated region body
PF: predicated region fallthrough
CT: control target
= control target key end

     0   :  { %8 = vsyncpa [#allocation3], 0  ;;  %s288_s0 = inlined_call_operand.hbm [shape: bf16[16,32], index: 0, kind: input, shape index: {}]   ;;  %s289_s1 = inlined_call_operand.hbm [shape: bf16[32,128], index: 1, kind: input, shape index: {}]   ;;  %s290_s2 = inlined_call_operand.vmem [shape: f32[1,128], index: 2, kind: input, shape index: {}]   ;;  %s291_s3 = inlined_call_operand.hbm [shape: f32[16,128], index: 3, kind: output, shape index: {}]  }
   0x1   :  { %9 = vsyncpa [#allocation6], 0 }
   0x2   :  { %10 = vsyncpa [#allocation4], 0  ;;  %s247_s12 = smov [#allocation2]  }
   0x3   :  { %s16_s13 = sshll.u32 %s247_s12, 4  ;;  %s17_s13 = int_to_ptr.vmem [resolvable:$true] %s16_s13 }
   0x4   :  { %s189_s14 = scalar_lea.vmem %s17_s13, 128  ;;  %p194_p1 = scmp.lt.s32.totalorder %s17_s13, %s17_s13 }
   0x5   :  { %p190_p0 = scmp.ne.s32.totalorder %s17_s13, %s189_s14  ;;  %p195_p2 = scmp.lt.s32.totalorder %s189_s14, %s189_s14 }
   0x7   :  { %p196_p3 = por %p195_p2, %p194_p1 }
   0x9   :  { %p197_p4 = pnand %p196_p3, %p190_p0 }
   0xb   :  { %200 = shalt.err (!%p197_p4)
}
   0xc   :  { %s248_s15 = smov 64   ;;  %s249_s16 = smov 4  }
   0xd   :  { %22 = dma.hbm_to_vmem [thread:$0]  %s288_s0, 128, %s17_s13, [#allocation3], %s248_s15, %s248_s15, %s249_s16  }
   0xe   :  { %s250_s19 = smov [#allocation5]  }
   0xf   :  { %s28_s20 = sshll.u32 %s250_s19, 4  ;;  %s29_s20 = int_to_ptr.vmem [resolvable:$true] %s28_s20 }
  0x10   :  { %s209_s21 = scalar_lea.vmem %s29_s20, 256  ;;  %p214_p6 = scmp.lt.s32.totalorder %s29_s20, %s29_s20 }
  0x11   :  { %p210_p5 = scmp.ne.s32.totalorder %s29_s20, %s209_s21  ;;  %p215_p7 = scmp.lt.s32.totalorder %s209_s21, %s209_s21 }
  0x13   :  { %p216_p8 = por %p215_p7, %p214_p6 }
  0x15   :  { %p217_p9 = pnand %p216_p8, %p210_p5 }
  0x17   :  { %220 = shalt.err (!%p217_p9)
}
  0x18   :  { %34 = dma.hbm_to_vmem [thread:$0]  %s289_s1, 256, %s29_s20, [#allocation6], %s248_s15, %s248_s15, %s249_s16  }
  0x19   :  { %241 = dma.done.wait [#allocation3], 128  }
  0x1a   :  { %242 = vsyncadd [#allocation3], 4294967168 }
  0x1b   :  { %243 = dma.done.wait [#allocation6], 256  }
  0x1c   :  { %244 = vsyncadd [#allocation6], 4294967040  ;;  %v251_v0 = vmov 0.0   ;;  %vm252_vm0 = vmmov 0   ;;  %v174_v1 = vld [vmem:[#allocation5 + $0x8] sm:$0xff]   ;;  %v175_v2 = vld [vmem:[#allocation5] sm:$0xff]  }
  0x1d   :  { %157 = vmatprep.subr.bf16.mxu0 %v251_v0  ;;  %161 = vmatprep.mubr.msk.bf16.mxu0 %vm252_vm0, %v251_v0  ;;  %v176_v3 = vld [vmem:[#allocation2] sm:$0xff]   ;;  %vm74_vm1 = vcmask 261120   ;;  %s253_s1 = smov [#allocation7]  }
  0x1e   :  { %158 = vmatpush3.bf16.msra.mxu0 %v174_v1  ;;  %v149_v4 = vld [vmem:[%s290_s2] ss:$0 sm:$0xff]  ;;  %s136_s25 = sshll.u32 %s253_s1, 4  ;;  %s137_s25 = int_to_ptr.vmem [resolvable:$true] %s136_s25 }
  0x1f   :  { %159 = vmatprep.subr.bf16.mxu0 %v251_v0  ;;  %s221_s2 = scalar_lea.vmem %s137_s25, 256  ;;  %p226_p11 = scmp.lt.s32.totalorder %s137_s25, %s137_s25 }
  0x20   :  { %p222_p10 = scmp.ne.s32.totalorder %s137_s25, %s221_s2  ;;  %p227_p12 = scmp.lt.s32.totalorder %s221_s2, %s221_s2 }
  0x22   :  { %160 = vmatpush3.bf16.msra.mxu0 %v175_v2  ;;  %p228_p13 = por %p227_p12, %p226_p11 }
  0x24   :  { %p229_p0 = pnand %p228_p13, %p222_p10 }
  0x25   :  { %162 = vmatmul.mubr.msk.bf16.vlgmr.msra.gmra.mxu0 %vm74_vm1, %v176_v3 }
  0xe5   :  { %v112_v5 = vpop.f32.mrf.mxu0 }
  0xe6   :  { %v113_v6 = vadd.f32 %v149_v4, %v112_v5 }
  0xe7   :  { %v163_v7 = vpop.f32.mrf.mxu0 }
  0xe8   :  { %v121_v8 = vmul.f32 0.70710677, %v113_v6  ;;  %v119_v14 = vmul.f32 0.5, %v113_v6 }
  0xe9   :  { %v115_v9 = vpop.f32.mrf.mxu0 }
  0xea   :  { %177 = verf.f32 %v121_v8  ;;  %v116_v10 = vadd.f32 %v149_v4, %v115_v9 }
  0xeb   :  { %v164_v11 = vpop.f32.mrf.mxu0 }
  0xec   :  { %v122_v12 = vmul.f32 0.70710677, %v116_v10  ;;  %v120_v18 = vmul.f32 0.5, %v116_v10 }
  0xee   :  { %179 = verf.f32 %v122_v12 }
  0xf7   :  { %v178_v13 = vpop.eup %177 }
  0xf8   :  { %v125_v15 = vadd.f32 1.0, %v178_v13 }
  0xfa   :  { %v127_v16 = vmul.f32 %v125_v15, %v119_v14 }
  0xfb   :  { %v180_v17 = vpop.eup %179 }
  0xfc   :  { %129 = vst [vmem:[#allocation7] sm:$0xff] %v127_v16  ;;  %v126_v19 = vadd.f32 1.0, %v180_v17 }
  0xfe   :  { %v128_v20 = vmul.f32 %v126_v19, %v120_v18 }
 0x100   :  { %130 = vst [vmem:[#allocation7 + $0x8] sm:$0xff] %v128_v20 }
 0x101   :  { %232 = shalt.err (!%p229_p0)
}
 0x102   :  { %s254_s26 = smov 128   ;;  %s255_s27 = smov 8  }
 0x103   :  { %142 = dma.vmem_to_hbm [thread:$0]  %s137_s25, 256, %s291_s3, [#allocation4], %s254_s26, %s254_s26, %s255_s27  }
 0x104   :  { %245 = dma.done.wait [#allocation4], 256  }
 0x105   :  { %246 = vsyncadd [#allocation4], 4294967040 }
 0x106   :  { %146 = vsyncpa [#allocation3], 1 }
 0x107   :  { %147 = vsyncpa [#allocation6], 1 }
 0x108   :  { %148 = vsyncpa [#allocation4], 1 }

</bundles_post_ra>
